<compile_context>
chip_gen: v7x
topology: tpu7x:2x2x1
jax: 0.10.0
libtpu: 0.0.40
codegen_flags: <defaults>
</compile_context>

<pallas_src>
import functools
import math

import jax
import jax.numpy as jnp
import numpy as np
from jax.experimental import pallas as pl
from jax.experimental.pallas import tpu as pltpu


def _graphconv_kernel(x_ref, gso_ref, w_ref, b_ref, o_ref, fm_ref, *, B, T):
    # x_ref:   (B*C_in*T, N)   x in original NCHW order, leading dims merged
    # gso_ref: (N, N)          gso[h, i]
    # w_ref:   (C_in, C_out)   weight in its native orientation
    # b_ref:   (1, C_out)
    # o_ref:   (B*T*N, C_out)  output slab (free wrapper reshape to (B,T,N,C_out))
    # fm_ref:  (C_in, B*T*N)   VMEM scratch for the relayouted first product
    n = gso_ref.shape[0]
    c_in, c_out = w_ref.shape

    # --- first contraction (graph shift), batched over (b, c, t) on the MXU ---
    # fm[(b,c,t), h] = sum_i x[b,c,t,i] * gso[h,i]   ==   x @ gso^T
    fm = jax.lax.dot_general(
        x_ref[...], gso_ref[...], (((1,), (1,)), ((), ())),
        preferred_element_type=jnp.float32)                 # (B*C_in*T, N)

    # --- relayout (b,c,t,h) -> fm_ref[c, (b*T + t)*N + h] ---------------------
    # leading-dim split is free; the per-(b,t) selects are small static
    # sublane gathers + lane-window stores into VMEM scratch (not HBM).
    fm4 = fm.reshape(B, c_in, T, n)
    for b in range(B):
        for t in range(T):
            col = (b * T + t) * n
            fm_ref[:, col:col + n] = fm4[b, :, t, :]

    # --- second contraction (feature mixing), oriented to store order --------
    # sm[(b,t,h), j] = sum_c fm_ref[c, (b,t,h)] * W[c, j]
    sm = jax.lax.dot_general(
        fm_ref[...], w_ref[...], (((0,), (0,)), ((), ())),
        preferred_element_type=jnp.float32)                 # (B*T*N, C_out)

    # --- epilogue: bias added once in f32, one dense store --------------------
    o_ref[...] = (sm + b_ref[...]).astype(o_ref.dtype)


def graph_conv(x_nchw, gso, weight, bias):
    """x_nchw: (B, C_in, T, N) float32. Returns (B, T, N, C_out)."""
    B, c_in, T, N = x_nchw.shape
    c_out = weight.shape[1]

    # Free layout plumbing only (no HBM transpose of the activation):
    x_r = x_nchw.reshape(B * c_in * T, N)   # contiguous merge of leading dims
    bias2d = bias.reshape(1, c_out)

    flops = 2 * B * T * N * (c_in * N + c_in * c_out)
    bytes_accessed = 4 * (x_r.size + gso.size + weight.size + bias.size
                          + B * T * N * c_out)

    out = pl.pallas_call(
        functools.partial(_graphconv_kernel, B=B, T=T),
        out_shape=jax.ShapeDtypeStruct((B * T * N, c_out), x_nchw.dtype),
        grid_spec=pltpu.PrefetchScalarGridSpec(
            num_scalar_prefetch=0,
            # Single grid step: the whole problem fits comfortably in VMEM and
            # per-step / launch overhead was the measured bottleneck.
            # (v7x alternative: grid=(B,) "parallel" for the 2-TC split; at
            #  this size the single-step version is expected to win.)
            grid=(1,),
            in_specs=[
                # every block equals the full array dims -> (8,128) rule is
                # satisfied trivially; all operands resident in VMEM.
                pl.BlockSpec((B * c_in * T, N), lambda i: (0, 0)),
                pl.BlockSpec((N, N), lambda i: (0, 0)),
                pl.BlockSpec((c_in, c_out), lambda i: (0, 0)),
                pl.BlockSpec((1, c_out), lambda i: (0, 0)),
            ],
            out_specs=pl.BlockSpec((B * T * N, c_out), lambda i: (0, 0)),
            scratch_shapes=[pltpu.VMEM((c_in, B * T * N), jnp.float32)],
        ),
        compiler_params=pltpu.CompilerParams(
            dimension_semantics=("arbitrary",)),
        cost_estimate=pl.CostEstimate(
            flops=flops, transcendentals=0, bytes_accessed=bytes_accessed),
    )(x_r, gso, weight, bias2d)

    return out.reshape(B, T, N, c_out)        # free contiguous reshape


def _reference(x_nchw, gso, weight, bias):
    x = jnp.transpose(x_nchw, (0, 2, 3, 1))
    fm = jnp.einsum('hi,btij->bthj', gso, x)
    sm = jnp.einsum('bthi,ij->bthj', fm, weight)
    return sm + bias


if __name__ == "__main__":
    # Small shapes consistent with the module: batch=2, c_in=4, T=8, N=16, c_out=32
    B, c_in, T, N, c_out = 2, 4, 8, 16, 32

    key = jax.random.PRNGKey(0)
    kx, kg, kw, kb = jax.random.split(key, 4)

    # Input activations (NCHW: B, C_in, T, N)
    x = jax.random.normal(kx, (B, c_in, T, N), dtype=jnp.float32)

    # Deterministic graph shift operator: symmetric-normalized random adjacency.
    adj = (jax.random.uniform(kg, (N, N)) > 0.6).astype(jnp.float32)
    adj = jnp.maximum(adj, adj.T) + jnp.eye(N, dtype=jnp.float32)
    deg = jnp.sum(adj, axis=1)
    d_inv_sqrt = 1.0 / jnp.sqrt(deg)
    gso = adj * d_inv_sqrt[:, None] * d_inv_sqrt[None, :]

    # Parameters (shapes from __init__): weight (c_in, c_out), bias (c_out,)
    # kaiming_uniform_(a=sqrt(5)) on (c_in, c_out) -> bound = 1/sqrt(fan_in)
    fan_in = c_in
    bound = 1.0 / math.sqrt(fan_in)
    weight = jax.random.uniform(kw, (c_in, c_out), minval=-bound, maxval=bound,
                                dtype=jnp.float32)
    bias = jax.random.uniform(kb, (c_out,), minval=-bound, maxval=bound,
                              dtype=jnp.float32)

    out = graph_conv(x, gso, weight, bias)
    out = jax.block_until_ready(out)

    ref = _reference(x, gso, weight, bias)
    np.testing.assert_allclose(np.asarray(out), np.asarray(ref),
                               rtol=1e-5, atol=1e-5)
    print("KERNEL_OK")
</pallas_src>

<mosaic_0001>
module attributes {stable_mosaic.version = 11 : i64} {
  func.func @_graphconv_kernel(%arg0: i32, %arg1: memref<64x16xf32, #tpu.memory_space<vmem>>, %arg2: memref<16x16xf32, #tpu.memory_space<vmem>>, %arg3: memref<4x32xf32, #tpu.memory_space<vmem>>, %arg4: memref<1x32xf32, #tpu.memory_space<vmem>>, %arg5: memref<256x32xf32, #tpu.memory_space<vmem>>, %arg6: memref<4x256xf32, #tpu.memory_space<vmem>>) attributes {dimension_semantics = [#tpu.dimension_semantics<arbitrary>], iteration_bounds = array<i64: 1>, scalar_prefetch = 0 : i64, scratch_operands = 1 : i64, tpu.core_type = #tpu.core_type<tc>, window_params = [{pipeline_mode = #tpu.pipeline_mode<synchronous>, transform_indices = @transform_0, window_bounds = array<i64: 64, 16>}, {pipeline_mode = #tpu.pipeline_mode<synchronous>, transform_indices = @transform_1, window_bounds = array<i64: 16, 16>}, {pipeline_mode = #tpu.pipeline_mode<synchronous>, transform_indices = @transform_2, window_bounds = array<i64: 4, 32>}, {pipeline_mode = #tpu.pipeline_mode<synchronous>, transform_indices = @transform_3, window_bounds = array<i64: 1, 32>}, {pipeline_mode = #tpu.pipeline_mode<synchronous>, transform_indices = @transform_4, window_bounds = array<i64: 256, 32>}]} {
    %c0 = arith.constant 0 : index
    %c0_0 = arith.constant 0 : index
    %0 = vector.load %arg1[%c0, %c0_0] : memref<64x16xf32, #tpu.memory_space<vmem>>, vector<64x16xf32>
    %c0_1 = arith.constant 0 : index
    %c0_2 = arith.constant 0 : index
    %1 = vector.load %arg2[%c0_1, %c0_2] : memref<16x16xf32, #tpu.memory_space<vmem>>, vector<16x16xf32>
    %cst = arith.constant dense<0.000000e+00> : vector<64x16xf32>
    %2 = tpu.matmul %0, %1, %cst {dimension_numbers = #tpu.dot_dimension_numbers<[1], [1], [0], [0], [0, 0, 1, 0], [], []>} : vector<64x16xf32>, vector<16x16xf32>, vector<64x16xf32> -> vector<64x16xf32>
    %3 = vector.shape_cast %2 : vector<64x16xf32> to vector<2x4x8x16xf32>
    %4 = vector.extract_strided_slice %3 {offsets = [0, 0, 0, 0], sizes = [1, 4, 1, 16], strides = [1, 1, 1, 1]} : vector<2x4x8x16xf32> to vector<1x4x1x16xf32>
    %5 = vector.shape_cast %4 : vector<1x4x1x16xf32> to vector<4x16xf32>
    %c0_3 = arith.constant 0 : index
    %c0_4 = arith.constant 0 : index
    %6 = vector.load %arg6[%c0_3, %c0_4] : memref<4x256xf32, #tpu.memory_space<vmem>>, vector<4x16xf32>
    tpu.vector_store %arg6[%c0_3, %c0_4], %5 {strides = array<i32>} : memref<4x256xf32, #tpu.memory_space<vmem>>, vector<4x16xf32>,
    %7 = vector.extract_strided_slice %3 {offsets = [0, 0, 1, 0], sizes = [1, 4, 1, 16], strides = [1, 1, 1, 1]} : vector<2x4x8x16xf32> to vector<1x4x1x16xf32>
    %8 = vector.shape_cast %7 : vector<1x4x1x16xf32> to vector<4x16xf32>
    %c0_5 = arith.constant 0 : index
    %c16 = arith.constant 16 : index
    %9 = vector.load %arg6[%c0_5, %c16] : memref<4x256xf32, #tpu.memory_space<vmem>>, vector<4x16xf32>
    tpu.vector_store %arg6[%c0_5, %c16], %8 {strides = array<i32>} : memref<4x256xf32, #tpu.memory_space<vmem>>, vector<4x16xf32>,
    %10 = vector.extract_strided_slice %3 {offsets = [0, 0, 2, 0], sizes = [1, 4, 1, 16], strides = [1, 1, 1, 1]} : vector<2x4x8x16xf32> to vector<1x4x1x16xf32>
    %11 = vector.shape_cast %10 : vector<1x4x1x16xf32> to vector<4x16xf32>
    %c0_6 = arith.constant 0 : index
    %c32 = arith.constant 32 : index
    %12 = vector.load %arg6[%c0_6, %c32] : memref<4x256xf32, #tpu.memory_space<vmem>>, vector<4x16xf32>
    tpu.vector_store %arg6[%c0_6, %c32], %11 {strides = array<i32>} : memref<4x256xf32, #tpu.memory_space<vmem>>, vector<4x16xf32>,
    %13 = vector.extract_strided_slice %3 {offsets = [0, 0, 3, 0], sizes = [1, 4, 1, 16], strides = [1, 1, 1, 1]} : vector<2x4x8x16xf32> to vector<1x4x1x16xf32>
    %14 = vector.shape_cast %13 : vector<1x4x1x16xf32> to vector<4x16xf32>
    %c0_7 = arith.constant 0 : index
    %c48 = arith.constant 48 : index
    %15 = vector.load %arg6[%c0_7, %c48] : memref<4x256xf32, #tpu.memory_space<vmem>>, vector<4x16xf32>
    tpu.vector_store %arg6[%c0_7, %c48], %14 {strides = array<i32>} : memref<4x256xf32, #tpu.memory_space<vmem>>, vector<4x16xf32>,
    %16 = vector.extract_strided_slice %3 {offsets = [0, 0, 4, 0], sizes = [1, 4, 1, 16], strides = [1, 1, 1, 1]} : vector<2x4x8x16xf32> to vector<1x4x1x16xf32>
    %17 = vector.shape_cast %16 : vector<1x4x1x16xf32> to vector<4x16xf32>
    %c0_8 = arith.constant 0 : index
    %c64 = arith.constant 64 : index
    %18 = vector.load %arg6[%c0_8, %c64] : memref<4x256xf32, #tpu.memory_space<vmem>>, vector<4x16xf32>
    tpu.vector_store %arg6[%c0_8, %c64], %17 {strides = array<i32>} : memref<4x256xf32, #tpu.memory_space<vmem>>, vector<4x16xf32>,
    %19 = vector.extract_strided_slice %3 {offsets = [0, 0, 5, 0], sizes = [1, 4, 1, 16], strides = [1, 1, 1, 1]} : vector<2x4x8x16xf32> to vector<1x4x1x16xf32>
    %20 = vector.shape_cast %19 : vector<1x4x1x16xf32> to vector<4x16xf32>
    %c0_9 = arith.constant 0 : index
    %c80 = arith.constant 80 : index
    %21 = vector.load %arg6[%c0_9, %c80] : memref<4x256xf32, #tpu.memory_space<vmem>>, vector<4x16xf32>
    tpu.vector_store %arg6[%c0_9, %c80], %20 {strides = array<i32>} : memref<4x256xf32, #tpu.memory_space<vmem>>, vector<4x16xf32>,
    %22 = vector.extract_strided_slice %3 {offsets = [0, 0, 6, 0], sizes = [1, 4, 1, 16], strides = [1, 1, 1, 1]} : vector<2x4x8x16xf32> to vector<1x4x1x16xf32>
    %23 = vector.shape_cast %22 : vector<1x4x1x16xf32> to vector<4x16xf32>
    %c0_10 = arith.constant 0 : index
    %c96 = arith.constant 96 : index
    %24 = vector.load %arg6[%c0_10, %c96] : memref<4x256xf32, #tpu.memory_space<vmem>>, vector<4x16xf32>
    tpu.vector_store %arg6[%c0_10, %c96], %23 {strides = array<i32>} : memref<4x256xf32, #tpu.memory_space<vmem>>, vector<4x16xf32>,
    %25 = vector.extract_strided_slice %3 {offsets = [0, 0, 7, 0], sizes = [1, 4, 1, 16], strides = [1, 1, 1, 1]} : vector<2x4x8x16xf32> to vector<1x4x1x16xf32>
    %26 = vector.shape_cast %25 : vector<1x4x1x16xf32> to vector<4x16xf32>
    %c0_11 = arith.constant 0 : index
    %c112 = arith.constant 112 : index
    %27 = vector.load %arg6[%c0_11, %c112] : memref<4x256xf32, #tpu.memory_space<vmem>>, vector<4x16xf32>
    tpu.vector_store %arg6[%c0_11, %c112], %26 {strides = array<i32>} : memref<4x256xf32, #tpu.memory_space<vmem>>, vector<4x16xf32>,
    %28 = vector.extract_strided_slice %3 {offsets = [1, 0, 0, 0], sizes = [1, 4, 1, 16], strides = [1, 1, 1, 1]} : vector<2x4x8x16xf32> to vector<1x4x1x16xf32>
    %29 = vector.shape_cast %28 : vector<1x4x1x16xf32> to vector<4x16xf32>
    %c0_12 = arith.constant 0 : index
    %c128 = arith.constant 128 : index
    %30 = vector.load %arg6[%c0_12, %c128] : memref<4x256xf32, #tpu.memory_space<vmem>>, vector<4x16xf32>
    tpu.vector_store %arg6[%c0_12, %c128], %29 {strides = array<i32>} : memref<4x256xf32, #tpu.memory_space<vmem>>, vector<4x16xf32>,
    %31 = vector.extract_strided_slice %3 {offsets = [1, 0, 1, 0], sizes = [1, 4, 1, 16], strides = [1, 1, 1, 1]} : vector<2x4x8x16xf32> to vector<1x4x1x16xf32>
    %32 = vector.shape_cast %31 : vector<1x4x1x16xf32> to vector<4x16xf32>
    %c0_13 = arith.constant 0 : index
    %c144 = arith.constant 144 : index
    %33 = vector.load %arg6[%c0_13, %c144] : memref<4x256xf32, #tpu.memory_space<vmem>>, vector<4x16xf32>
    tpu.vector_store %arg6[%c0_13, %c144], %32 {strides = array<i32>} : memref<4x256xf32, #tpu.memory_space<vmem>>, vector<4x16xf32>,
    %34 = vector.extract_strided_slice %3 {offsets = [1, 0, 2, 0], sizes = [1, 4, 1, 16], strides = [1, 1, 1, 1]} : vector<2x4x8x16xf32> to vector<1x4x1x16xf32>
    %35 = vector.shape_cast %34 : vector<1x4x1x16xf32> to vector<4x16xf32>
    %c0_14 = arith.constant 0 : index
    %c160 = arith.constant 160 : index
    %36 = vector.load %arg6[%c0_14, %c160] : memref<4x256xf32, #tpu.memory_space<vmem>>, vector<4x16xf32>
    tpu.vector_store %arg6[%c0_14, %c160], %35 {strides = array<i32>} : memref<4x256xf32, #tpu.memory_space<vmem>>, vector<4x16xf32>,
    %37 = vector.extract_strided_slice %3 {offsets = [1, 0, 3, 0], sizes = [1, 4, 1, 16], strides = [1, 1, 1, 1]} : vector<2x4x8x16xf32> to vector<1x4x1x16xf32>
    %38 = vector.shape_cast %37 : vector<1x4x1x16xf32> to vector<4x16xf32>
    %c0_15 = arith.constant 0 : index
    %c176 = arith.constant 176 : index
    %39 = vector.load %arg6[%c0_15, %c176] : memref<4x256xf32, #tpu.memory_space<vmem>>, vector<4x16xf32>
    tpu.vector_store %arg6[%c0_15, %c176], %38 {strides = array<i32>} : memref<4x256xf32, #tpu.memory_space<vmem>>, vector<4x16xf32>,
    %40 = vector.extract_strided_slice %3 {offsets = [1, 0, 4, 0], sizes = [1, 4, 1, 16], strides = [1, 1, 1, 1]} : vector<2x4x8x16xf32> to vector<1x4x1x16xf32>
    %41 = vector.shape_cast %40 : vector<1x4x1x16xf32> to vector<4x16xf32>
    %c0_16 = arith.constant 0 : index
    %c192 = arith.constant 192 : index
    %42 = vector.load %arg6[%c0_16, %c192] : memref<4x256xf32, #tpu.memory_space<vmem>>, vector<4x16xf32>
    tpu.vector_store %arg6[%c0_16, %c192], %41 {strides = array<i32>} : memref<4x256xf32, #tpu.memory_space<vmem>>, vector<4x16xf32>,
    %43 = vector.extract_strided_slice %3 {offsets = [1, 0, 5, 0], sizes = [1, 4, 1, 16], strides = [1, 1, 1, 1]} : vector<2x4x8x16xf32> to vector<1x4x1x16xf32>
    %44 = vector.shape_cast %43 : vector<1x4x1x16xf32> to vector<4x16xf32>
    %c0_17 = arith.constant 0 : index
    %c208 = arith.constant 208 : index
    %45 = vector.load %arg6[%c0_17, %c208] : memref<4x256xf32, #tpu.memory_space<vmem>>, vector<4x16xf32>
    tpu.vector_store %arg6[%c0_17, %c208], %44 {strides = array<i32>} : memref<4x256xf32, #tpu.memory_space<vmem>>, vector<4x16xf32>,
    %46 = vector.extract_strided_slice %3 {offsets = [1, 0, 6, 0], sizes = [1, 4, 1, 16], strides = [1, 1, 1, 1]} : vector<2x4x8x16xf32> to vector<1x4x1x16xf32>
    %47 = vector.shape_cast %46 : vector<1x4x1x16xf32> to vector<4x16xf32>
    %c0_18 = arith.constant 0 : index
    %c224 = arith.constant 224 : index
    %48 = vector.load %arg6[%c0_18, %c224] : memref<4x256xf32, #tpu.memory_space<vmem>>, vector<4x16xf32>
    tpu.vector_store %arg6[%c0_18, %c224], %47 {strides = array<i32>} : memref<4x256xf32, #tpu.memory_space<vmem>>, vector<4x16xf32>,
    %49 = vector.extract_strided_slice %3 {offsets = [1, 0, 7, 0], sizes = [1, 4, 1, 16], strides = [1, 1, 1, 1]} : vector<2x4x8x16xf32> to vector<1x4x1x16xf32>
    %50 = vector.shape_cast %49 : vector<1x4x1x16xf32> to vector<4x16xf32>
    %c0_19 = arith.constant 0 : index
    %c240 = arith.constant 240 : index
    %51 = vector.load %arg6[%c0_19, %c240] : memref<4x256xf32, #tpu.memory_space<vmem>>, vector<4x16xf32>
    tpu.vector_store %arg6[%c0_19, %c240], %50 {strides = array<i32>} : memref<4x256xf32, #tpu.memory_space<vmem>>, vector<4x16xf32>,
    %c0_20 = arith.constant 0 : index
    %c0_21 = arith.constant 0 : index
    %52 = vector.load %arg6[%c0_20, %c0_21] : memref<4x256xf32, #tpu.memory_space<vmem>>, vector<4x256xf32>
    %c0_22 = arith.constant 0 : index
    %c0_23 = arith.constant 0 : index
    %53 = vector.load %arg3[%c0_22, %c0_23] : memref<4x32xf32, #tpu.memory_space<vmem>>, vector<4x32xf32>
    %cst_24 = arith.constant dense<0.000000e+00> : vector<256x32xf32>
    %54 = tpu.matmul %52, %53, %cst_24 {dimension_numbers = #tpu.dot_dimension_numbers<[0], [0], [1], [1], [0, 1, 1, 1], [], []>} : vector<4x256xf32>, vector<4x32xf32>, vector<256x32xf32> -> vector<256x32xf32>
    %c0_25 = arith.constant 0 : index
    %c0_26 = arith.constant 0 : index
    %55 = vector.load %arg4[%c0_25, %c0_26] : memref<1x32xf32, #tpu.memory_space<vmem>>, vector<1x32xf32>
    %56 = vector.broadcast %55 : vector<1x32xf32> to vector<256x32xf32>
    %57 = arith.addf %54, %56 : vector<256x32xf32>
    %c0_27 = arith.constant 0 : index
    %c0_28 = arith.constant 0 : index
    %58 = vector.load %arg5[%c0_27, %c0_28] : memref<256x32xf32, #tpu.memory_space<vmem>>, vector<256x32xf32>
    tpu.vector_store %arg5[%c0_27, %c0_28], %57 {strides = array<i32>} : memref<256x32xf32, #tpu.memory_space<vmem>>, vector<256x32xf32>,
    return
  }
  func.func @transform_0(%arg0: i32) -> (i32, i32) {
    %c0_i32 = arith.constant 0 : i32
    %c0_i32_0 = arith.constant 0 : i32
    %c0_i32_1 = arith.constant 0 : i32
    return %c0_i32, %c0_i32_0 : i32, i32
  }
  func.func @transform_1(%arg0: i32) -> (i32, i32) {
    %c0_i32 = arith.constant 0 : i32
    %c0_i32_0 = arith.constant 0 : i32
    %c0_i32_1 = arith.constant 0 : i32
    return %c0_i32, %c0_i32_0 : i32, i32
  }
  func.func @transform_2(%arg0: i32) -> (i32, i32) {
    %c0_i32 = arith.constant 0 : i32
    %c0_i32_0 = arith.constant 0 : i32
    %c0_i32_1 = arith.constant 0 : i32
    return %c0_i32, %c0_i32_0 : i32, i32
  }
  func.func @transform_3(%arg0: i32) -> (i32, i32) {
    %c0_i32 = arith.constant 0 : i32
    %c0_i32_0 = arith.constant 0 : i32
    %c0_i32_1 = arith.constant 0 : i32
    return %c0_i32, %c0_i32_0 : i32, i32
  }
  func.func @transform_4(%arg0: i32) -> (i32, i32) {
    %c0_i32 = arith.constant 0 : i32
    %c0_i32_0 = arith.constant 0 : i32
    %c0_i32_1 = arith.constant 0 : i32
    return %c0_i32, %c0_i32_0 : i32, i32
  }
}

</mosaic_0001>

<bundles_post_ra>
// kernel: tpu_custom_call.1
= control target key start
LH: loop header
LB: loop body
LE: loop exit
PB: predicated region body
PF: predicated region fallthrough
CT: control target
= control target key end

     0   :  { %vm27_vm0 = vcmask 130048   ;;  %vm168_vm2 = vcmask 1041409   ;;  %vm170_vm3 = vcmask 1045509   ;;  %vm173_vm4 = vcmask 1042434   ;;  %s1007_s8 = smov 16   ;;  %s1008_s9 = smov 48   ;;  %s1535_s1 = inlined_call_operand.vmem [shape: f32[16,16], index: 1, kind: input, shape index: {}]   ;;  %s1536_s0 = inlined_call_operand.vmem [shape: f32[64,16], index: 0, kind: input, shape index: {}]   ;;  %s1537_s2 = inlined_call_operand.vmem [shape: f32[4,32], index: 2, kind: input, shape index: {}]   ;;  %s1538_s3 = inlined_call_operand.vmem [shape: f32[1,32], index: 3, kind: input, shape index: {}]   ;;  %s1539_s4 = inlined_call_operand.vmem [shape: f32[256,32], index: 4, kind: output, shape index: {}]  }
   0x1   :  { %v25_v0 = vld [vmem:[%s1535_s1] sm:$0xff]  ;;  %v26_v1 = vld [vmem:[%s1535_s1 + $0x8] sm:$0xff]  ;;  %vm990_vm1 = vmpackc.low %vm27_vm0, %vm27_vm0  ;;  %vm175_vm5 = vcmask 1046534   ;;  %vm178_vm6 = vcmask 1043459   ;;  %vm180_vm7 = vcmask 1047559   ;;  %s1009_s10 = smov 64  }
   0x2   :  { %v989_v2 = vpack.c.bf16 %v26_v1, %v25_v0  ;;  %v17_v3 = vld [vmem:[%s1536_s0] sm:$0xff]  ;;  %v18_v4 = vld [vmem:[%s1536_s0 + $0x8] sm:$0xff]  ;;  %v19_v5 = vld [vmem:[%s1536_s0 + $0x10] sm:$0xff]  ;;  %vm183_vm8 = vcmask 125952   ;;  %s1010_s11 = smov 80   ;;  %s1011_s12 = smov 96  }
   0x3   :  { %927 = vmatprep.mubr.msk.f32.mxu0 %vm27_vm0, %v17_v3  ;;  %v20_v6 = vld [vmem:[%s1536_s0 + $0x18] sm:$0xff]  ;;  %v21_v7 = vld [vmem:[%s1536_s0 + $0x20] sm:$0xff]  ;;  %v22_v8 = vld [vmem:[%s1536_s0 + $0x28] sm:$0xff]  ;;  %s1012_s13 = smov 112   ;;  %vm197_vm9 = vcmask 257152   ;;  %vm211_vm10 = vcmask 388352  }
   0x4   :  { %991 = vmatprep.subr.msk.bf16.mxu0 %vm990_vm1, %v989_v2  ;;  %v23_v9 = vld [vmem:[%s1536_s0 + $0x30] sm:$0xff]  ;;  %v24_v10 = vld [vmem:[%s1536_s0 + $0x38] sm:$0xff]  ;;  %s1006_s0 = smov 32   ;;  %vm225_vm11 = vcmask 519552   ;;  %vm243_vm12 = vcmask 650752   ;;  %vm257_vm13 = vcmask 781952  }
   0x5   :  { %994 = vmatpush3.bf16.xpose.msk.msra.mxu0 %vm990_vm1, %v989_v2  ;;  %vm271_vm14 = vcmask 913152   ;;  %vm285_vm15 = vcmask 1044352   ;;  %vm473_vm1 = vcmask 31744  }
   0xc   :  { %928 = vmatmul.mubr.msk.f32.vlgmr.msra.gmra.mrb[0].mxu0 %vm27_vm0, %v18_v4 }
   0xd   :  { %930 = vmatprep.mubr.msk.f32.mxu0 %vm27_vm0, %v19_v5 }
  0x10   :  { %931 = vmatmul.mubr.msk.f32.gmra.mrb[2].mxu0 %vm27_vm0, %v20_v6 }
  0x11   :  { %933 = vmatprep.mubr.msk.f32.mxu0 %vm27_vm0, %v21_v7 }
  0x14   :  { %934 = vmatmul.mubr.msk.f32.gmra.mrb[4].mxu0 %vm27_vm0, %v22_v8 }
  0x15   :  { %936 = vmatprep.mubr.msk.f32.mxu0 %vm27_vm0, %v23_v9 }
  0x18   :  { %937 = vmatmul.mubr.msk.f32.gmra.mrb[6].mxu0 %vm27_vm0, %v24_v10  ;;  %vm570_vm0 = vcmask 1043456  }
  0xdf   :  { %v929_v11 = vpop.f32.mrb[0].mxu0 }
  0xe0   :  { %v167_v12 = vrot.slane %v929_v11, 7  ;;  %v200_v13 = vrot.slane %v929_v11, 1  ;;  %v214_v14 = vrot.slane %v929_v11, 2  ;;  %v1078_v15 = vcombine.high %v929_v11, %v929_v11  ;;  %v124_v16 = vpop.f32.mrb[1].mxu0 }
  0xe1   :  { %v185_v17 = vrot.slane %v124_v16, 1  ;;  %v199_v18 = vrot.slane %v124_v16, 2  ;;  %v213_v19 = vrot.slane %v124_v16, 3  ;;  %v1080_v20 = vcombine.high %v124_v16, %v124_v16 }
  0xe2   :  { %v169_v21 = vsel %vm168_vm2, %v167_v12, %v124_v16  ;;  %v231_v22 = vrot.slane %v1078_v15, 7  ;;  %v260_v23 = vrot.slane %v1078_v15, 1  ;;  %v274_v24 = vrot.slane %v1078_v15, 2 }
  0xe3   :  { %v1087_v25 = vsel %vm170_vm3, %v167_v12, %v169_v21  ;;  %v245_v26 = vrot.slane %v1080_v20, 1  ;;  %v259_v27 = vrot.slane %v1080_v20, 2  ;;  %v273_v28 = vrot.slane %v1080_v20, 3  ;;  %v1092_v29 = vpop.f32.mrb[2].mxu0 }
  0xe4   :  { %v1096_v30 = vcombine.high %v1092_v29, %v1092_v29  ;;  %v1098_v31 = vpop.f32.mrb[3].mxu0  ;;  %v201_v32 = vsel %vm168_vm2, %v200_v13, %v199_v18  ;;  %v205_v33 = vrot.slane %v1092_v29, 7  ;;  %v186_v34 = vsel %vm168_vm2, %v929_v11, %v185_v17 }
  0xe5   :  { %v172_v35 = vrot.slane %v1098_v31, 6  ;;  %v1106_v36 = vcombine.high %v1098_v31, %v1098_v31  ;;  %v202_v37 = vsel %vm170_vm3, %v200_v13, %v201_v32  ;;  %v187_v38 = vsel %vm170_vm3, %v929_v11, %v186_v34 }
  0xe6   :  { %v203_v39 = vsel %vm173_vm4, %v1098_v31, %v202_v37  ;;  %v188_v40 = vrot.slane %v1098_v31, 7  ;;  %v191_v41 = vrot.slane %v1092_v29, 6  ;;  %v215_v42 = vsel %vm168_vm2, %v214_v14, %v213_v19 }
  0xe7   :  { %v1115_v43 = vpop.f32.mrb[4].mxu0  ;;  %v204_v44 = vsel %vm175_vm5, %v1098_v31, %v203_v39  ;;  %v216_v45 = vsel %vm170_vm3, %v214_v14, %v215_v42  ;;  %v217_v46 = vrot.slane %v1098_v31, 1  ;;  %v232_v47 = vsel %vm168_vm2, %v231_v22, %v1080_v20 }
  0xe8   :  { %v291_v48 = vrot.slane %v1115_v43, 7  ;;  %v316_v49 = vrot.slane %v1115_v43, 1  ;;  %v329_v50 = vrot.slane %v1115_v43, 2  ;;  %v1130_v51 = vcombine.high %v1115_v43, %v1115_v43  ;;  %v1132_v52 = vpop.f32.mrb[5].mxu0 }
  0xe9   :  { %v302_v53 = vrot.slane %v1132_v52, 1  ;;  %v315_v54 = vrot.slane %v1132_v52, 2  ;;  %v328_v55 = vrot.slane %v1132_v52, 3  ;;  %v1139_v56 = vcombine.high %v1132_v52, %v1132_v52 }
  0xea   :  { %v292_v57 = vsel %vm168_vm2, %v291_v48, %v1132_v52  ;;  %v206_v58 = vsel %vm178_vm6, %v205_v33, %v204_v44  ;;  %v189_v59 = vsel %vm173_vm4, %v188_v40, %v187_v38  ;;  %v218_v60 = vsel %vm173_vm4, %v217_v46, %v216_v45 }
  0xeb   :  { %v1147_v61 = vsel %vm170_vm3, %v291_v48, %v292_v57  ;;  %v358_v62 = vrot.slane %v1139_v56, 1  ;;  %v371_v63 = vrot.slane %v1139_v56, 2  ;;  %v384_v0 = vrot.slane %v1139_v56, 3  ;;  %v1152_v1 = vpop.f32.mrb[6].mxu0 }
  0xec   :  { %v207_v2 = vsel %vm180_vm7, %v205_v33, %v206_v58  ;;  %v190_v3 = vsel %vm175_vm5, %v188_v40, %v189_v59  ;;  %v1158_v4 = vcombine.high %v1152_v1, %v1152_v1  ;;  %v1160_v5 = vpop.f32.mrb[7].mxu0  ;;  %v219_v6 = vsel %vm175_vm5, %v217_v46, %v218_v60 }
  0xed   :  { %208 = vrot.lane.b32.xlu1 %v207_v2, %s1006_s0  ;;  %v192_v7 = vsel %vm178_vm6, %v191_v41, %v190_v3  ;;  %v294_v8 = vrot.slane %v1160_v5, 6  ;;  %v1168_v9 = vcombine.high %v1160_v5, %v1160_v5  ;;  %v220_v10 = vsel %vm178_vm6, %v1092_v29, %v219_v6 }
  0xee   :  { %v193_v11 = vsel %vm180_vm7, %v191_v41, %v192_v7  ;;  %v221_v12 = vsel %vm180_vm7, %v1092_v29, %v220_v10  ;;  %v317_v13 = vsel %vm168_vm2, %v316_v49, %v315_v54  ;;  %v321_v14 = vrot.slane %v1152_v1, 7 }
  0xef   :  { %194 = vrot.lane.b32.xlu0 %v193_v11, %s1007_s8  ;;  %v318_v16 = vsel %vm170_vm3, %v316_v49, %v317_v13  ;;  %v233_v17 = vsel %vm170_vm3, %v231_v22, %v232_v47  ;;  %v234_v18 = vrot.slane %v1106_v36, 6  ;;  %v237_v19 = vrot.slane %v1096_v30, 5 }
  0xf0   :  { %v319_v21 = vsel %vm173_vm4, %v1160_v5, %v318_v16  ;;  %v330_v32 = vsel %vm168_vm2, %v329_v50, %v328_v55  ;;  %v332_v33 = vrot.slane %v1160_v5, 1  ;;  %v246_v34 = vsel %vm168_vm2, %v1078_v15, %v245_v26 }
  0xf1   :  { %v320_v37 = vsel %vm175_vm5, %v1160_v5, %v319_v21  ;;  %v235_v22 = vsel %vm173_vm4, %v234_v18, %v233_v17  ;;  %v331_v38 = vsel %vm170_vm3, %v329_v50, %v330_v32  ;;  %v247_v39 = vsel %vm170_vm3, %v1078_v15, %v246_v34 }
  0xf2   :  { %v322_v40 = vsel %vm178_vm6, %v321_v14, %v320_v37  ;;  %v236_v41 = vsel %vm175_vm5, %v234_v18, %v235_v22  ;;  %v333_v42 = vsel %vm173_vm4, %v332_v33, %v331_v38  ;;  %v248_v44 = vrot.slane %v1106_v36, 7 }
  0xf3   :  { %222 = vrot.lane.b32.xlu0 %v221_v12, %s1008_s9  ;;  %v323_v26 = vsel %vm180_vm7, %v321_v14, %v322_v40  ;;  %v238_v45 = vsel %vm178_vm6, %v237_v19, %v236_v41  ;;  %v334_v46 = vsel %vm175_vm5, %v332_v33, %v333_v42  ;;  %v251_v47 = vrot.slane %v1096_v30, 6 }
  0xf4   :  { %324 = vrot.lane.b32.xlu1 %v323_v26, %s1006_s0  ;;  %v239_v48 = vsel %vm180_vm7, %v237_v19, %v238_v45  ;;  %v335_v49 = vsel %vm178_vm6, %v1152_v1, %v334_v46  ;;  %v249_v50 = vsel %vm173_vm4, %v248_v44, %v247_v39  ;;  %v372_v52 = vrot.slane %v1130_v51, 1 }
  0xf5   :  { %v336_v54 = vsel %vm180_vm7, %v1152_v1, %v335_v49  ;;  %v250_v55 = vsel %vm175_vm5, %v248_v44, %v249_v50  ;;  %v377_v57 = vrot.slane %v1158_v4, 7  ;;  %v303_v58 = vsel %vm168_vm2, %v1115_v43, %v302_v53 }
  0xf6   :  { %v252_v59 = vsel %vm178_vm6, %v251_v47, %v250_v55  ;;  %v373_v60 = vsel %vm168_vm2, %v372_v52, %v371_v63  ;;  %v304_v2 = vsel %vm170_vm3, %v1115_v43, %v303_v58  ;;  %v305_v3 = vrot.slane %v1160_v5, 7 }
  0xf7   :  { %240 = vrot.lane.b32.xlu0 %v239_v48, %s1009_s10  ;;  %v253_v6 = vsel %vm180_vm7, %v251_v47, %v252_v59  ;;  %v374_v7 = vsel %vm170_vm3, %v372_v52, %v373_v60  ;;  %v308_v10 = vrot.slane %v1152_v1, 6  ;;  %v345_v53 = vrot.slane %v1130_v51, 7 }
  0xf8   :  { %337 = vrot.lane.b32.xlu1 %v336_v54, %s1008_s9  ;;  %v375_v63 = vsel %vm173_vm4, %v1168_v9, %v374_v7  ;;  %v306_v11 = vsel %vm173_vm4, %v305_v3, %v304_v2  ;;  %v348_v43 = vrot.slane %v1168_v9, 6  ;;  %v351_v12 = vrot.slane %v1158_v4, 5 }
  0xf9   :  { %v376_v13 = vsel %vm175_vm5, %v1168_v9, %v375_v63  ;;  %v307_v14 = vsel %vm175_vm5, %v305_v3, %v306_v11  ;;  %v346_v16 = vsel %vm168_vm2, %v345_v53, %v1139_v56  ;;  %v261_v17 = vsel %vm168_vm2, %v260_v23, %v259_v27 }
  0xfa   :  { %v378_v18 = vsel %vm178_vm6, %v377_v57, %v376_v13  ;;  %v309_v19 = vsel %vm178_vm6, %v308_v10, %v307_v14  ;;  %v347_v21 = vsel %vm170_vm3, %v345_v53, %v346_v16  ;;  %v262_v32 = vsel %vm170_vm3, %v260_v23, %v261_v17 }
  0xfb   :  { %254 = vrot.lane.b32.xlu0 %v253_v6, %s1010_s11  ;;  %v379_v33 = vsel %vm180_vm7, %v377_v57, %v378_v18  ;;  %v310_v34 = vsel %vm180_vm7, %v308_v10, %v309_v19  ;;  %v349_v27 = vsel %vm173_vm4, %v348_v43, %v347_v21  ;;  %v263_v37 = vsel %vm173_vm4, %v1106_v36, %v262_v32  ;;  %v398_v18 = vld [vmem:[%s1537_s2] sm:$0xf] }
  0xfc   :  { %380 = vrot.lane.b32.xlu1 %v379_v33, %s1011_s12  ;;  %v350_v22 = vsel %vm175_vm5, %v348_v43, %v349_v27  ;;  %v264_v23 = vsel %vm175_vm5, %v1106_v36, %v263_v37  ;;  %v265_v38 = vrot.slane %v1096_v30, 7  ;;  %v359_v39 = vsel %vm168_vm2, %v1130_v51, %v358_v62  ;;  %939 = vmatprep.subr.msk.mxu0 %vm570_vm0, %v398_v18 }
  0xfd   :  { %v352_v40 = vsel %vm178_vm6, %v351_v12, %v350_v22  ;;  %v360_v41 = vsel %vm170_vm3, %v1130_v51, %v359_v39  ;;  %v361_v42 = vrot.slane %v1168_v9, 7  ;;  %v364_v44 = vrot.slane %v1158_v4, 6  ;;  %995 = vmatprep.subr.msk.mxu1 %vm570_vm0, %v398_v18  ;;  %940 = vmatpush3.msk.msra.mxu0 %vm570_vm0, %v398_v18 }
  0xfe   :  { %v353_v26 = vsel %vm180_vm7, %v351_v12, %v352_v40  ;;  %v266_v45 = vsel %vm178_vm6, %v265_v38, %v264_v23  ;;  %v275_v46 = vsel %vm168_vm2, %v274_v24, %v273_v28  ;;  %v277_v62 = vrot.slane %v1106_v36, 1  ;;  %996 = vmatpush3.msk.msra.mxu1 %vm570_vm0, %v398_v18 }
  0xff   :  { %311 = vrot.lane.b32.xlu0 %v310_v34, %s1007_s8  ;;  %v267_v47 = vsel %vm180_vm7, %v265_v38, %v266_v45  ;;  %v362_v48 = vsel %vm173_vm4, %v361_v42, %v360_v41  ;;  %v276_v49 = vsel %vm170_vm3, %v274_v24, %v275_v46  ;;  %v385_v50 = vrot.slane %v1130_v51, 2 }
 0x100   :  { %354 = vrot.lane.b32.xlu1 %v353_v26, %s1009_s10  ;;  %v363_v20 = vsel %vm175_vm5, %v361_v42, %v362_v48  ;;  %v278_v28 = vsel %vm173_vm4, %v277_v62, %v276_v49  ;;  %v388_v36 = vrot.slane %v1168_v9, 1  ;;  %v177_v52 = vrot.slane %v1092_v29, 5 }
 0x101   :  { %v365_v54 = vsel %vm178_vm6, %v364_v44, %v363_v20  ;;  %v279_v55 = vsel %vm175_vm5, %v277_v62, %v278_v28  ;;  %v386_v15 = vsel %vm168_vm2, %v385_v50, %v384_v0  ;;  %v174_v24 = vsel %vm173_vm4, %v172_v35, %v1087_v25 }
 0x102   :  { %v366_v51 = vsel %vm180_vm7, %v364_v44, %v365_v54  ;;  %v280_v9 = vsel %vm178_vm6, %v1096_v30, %v279_v55  ;;  %v387_v29 = vsel %vm170_vm3, %v385_v50, %v386_v15  ;;  %v176_v57 = vsel %vm175_vm5, %v172_v35, %v174_v24 }
 0x103   :  { %268 = vrot.lane.b32.xlu0 %v267_v47, %s1011_s12  ;;  %v281_v56 = vsel %vm180_vm7, %v1096_v30, %v280_v9  ;;  %v389_v0 = vsel %vm173_vm4, %v388_v36, %v387_v29  ;;  %v179_v25 = vsel %vm178_vm6, %v177_v52, %v176_v57  ;;  %v297_v35 = vrot.slane %v1152_v1, 5  ;;  %v1373_v9 = vld [vmem:[%s1538_s3] ss:$0 sm:$0xff] }
 0x104   :  { %367 = vrot.lane.b32.xlu1 %v366_v51, %s1010_s11  ;;  %v390_v58 = vsel %vm175_vm5, %v388_v36, %v389_v0  ;;  %v181_v59 = vsel %vm180_vm7, %v177_v52, %v179_v25  ;;  %v295_v30 = vsel %vm173_vm4, %v294_v8, %v1147_v61  ;;  %vm799_vm2 = vcmask 261120  }
 0x105   :  { %v391_v31 = vsel %vm178_vm6, %v1158_v4, %v390_v58  ;;  %184 = vst.msk [vmem:[#allocation2] sm:$0xf] %vm183_vm8, %v181_v59  ;;  %v296_v2 = vsel %vm175_vm5, %v294_v8, %v295_v30 }
 0x106   :  { %v392_v60 = vsel %vm180_vm7, %v1158_v4, %v391_v31  ;;  %v298_v3 = vsel %vm178_vm6, %v297_v35, %v296_v2 }
 0x107   :  { %282 = vrot.lane.b32.xlu0 %v281_v56, %s1012_s13  ;;  %v299_v6 = vsel %vm180_vm7, %v297_v35, %v298_v3 }
 0x108   :  { %393 = vrot.lane.b32.xlu1 %v392_v60, %s1012_s13  ;;  %301 = vst.msk [vmem:[#allocation2 + $0x4] sm:$0xf] %vm183_vm8, %v299_v6 }
 0x15f   :  { %v209_v61 = vpop.permute.xlu1 %208 }
 0x161   :  { %v195_v1 = vpop.permute.xlu0 %194 }
 0x162   :  { %198 = vst.msk [vmem:[#allocation2] sm:$0xf] %vm197_vm9, %v195_v1 }
 0x163   :  { %212 = vst.msk [vmem:[#allocation2] sm:$0xf] %vm211_vm10, %v209_v61 }
 0x165   :  { %v223_v4 = vpop.permute.xlu0 %222 }
 0x166   :  { %226 = vst.msk [vmem:[#allocation2] sm:$0xf] %vm225_vm11, %v223_v4  ;;  %v325_v5 = vpop.permute.xlu1 %324 }
 0x169   :  { %v241_v8 = vpop.permute.xlu0 %240 }
 0x16a   :  { %244 = vst.msk [vmem:[#allocation2] sm:$0xf] %vm243_vm12, %v241_v8  ;;  %v338_v7 = vpop.permute.xlu1 %337 }
 0x16d   :  { %v255_v10 = vpop.permute.xlu0 %254 }
 0x16e   :  { %258 = vst.msk [vmem:[#allocation2] sm:$0xf] %vm257_vm13, %v255_v10  ;;  %v381_v53 = vpop.permute.xlu1 %380 }
 0x171   :  { %v312_v63 = vpop.permute.xlu0 %311 }
 0x172   :  { %314 = vst.msk [vmem:[#allocation2 + $0x4] sm:$0xf] %vm197_vm9, %v312_v63  ;;  %v355_v11 = vpop.permute.xlu1 %354 }
 0x173   :  { %327 = vst.msk [vmem:[#allocation2 + $0x4] sm:$0xf] %vm211_vm10, %v325_v5 }
 0x174   :  { %340 = vst.msk [vmem:[#allocation2 + $0x4] sm:$0xf] %vm225_vm11, %v338_v7 }
 0x175   :  { %357 = vst.msk [vmem:[#allocation2 + $0x4] sm:$0xf] %vm243_vm12, %v355_v11  ;;  %v269_v43 = vpop.permute.xlu0 %268 }
 0x176   :  { %272 = vst.msk [vmem:[#allocation2] sm:$0xf] %vm271_vm14, %v269_v43  ;;  %v368_v12 = vpop.permute.xlu1 %367 }
 0x177   :  { %370 = vst.msk [vmem:[#allocation2 + $0x4] sm:$0xf] %vm257_vm13, %v368_v12 }
 0x178   :  { %383 = vst.msk [vmem:[#allocation2 + $0x4] sm:$0xf] %vm271_vm14, %v381_v53 }
 0x179   :  { %v283_v13 = vpop.permute.xlu0 %282 }
 0x17a   :  { %286 = vst.msk [vmem:[#allocation2] sm:$0xf] %vm285_vm15, %v283_v13  ;;  %v394_v14 = vpop.permute.xlu1 %393 }
 0x17b   :  { %396 = vst.msk [vmem:[#allocation2 + $0x4] sm:$0xf] %vm285_vm15, %v394_v14 }
 0x182   :  { %v397_v16 = vld [vmem:[#allocation2] sm:$0xff] }
 0x183   :  { %409 = vxpose.xlu0.b32.start.end [1/1] (short) %v397_v16, 128  ;;  %v407_v17 = vcombine.high %v397_v16, %v397_v16 }
 0x185   :  { %441 = vxpose.xlu1.b32.start.end [1/1] (short) %v407_v17, 128 }
 0x203   :  { %v425_v19 = vpop.trf.xlu0 }
 0x204   :  { %941 = vmatprep.mubr.msk.f32.mxu0 %vm473_vm1, %v425_v19 }
 0x205   :  { %v457_v21 = vpop.trf.xlu1 }
 0x207   :  { %v426_v32 = vpop.trf.xlu0 }
 0x208   :  { %942 = vmatmul.mubr.msk.f32.vlgmr.msra.gmra.mrb[8].mxu0 %vm473_vm1, %v426_v32 }
 0x209   :  { %v458_v33 = vpop.trf.xlu1 }
 0x20b   :  { %v427_v34 = vpop.trf.xlu0 }
 0x20c   :  { %944 = vmatprep.mubr.msk.f32.mxu0 %vm473_vm1, %v427_v34 }
 0x20d   :  { %v459_v37 = vpop.trf.xlu1 }
 0x20f   :  { %v428_v27 = vpop.trf.xlu0 }
 0x210   :  { %945 = vmatmul.mubr.msk.f32.gmra.mrb[10].mxu0 %vm473_vm1, %v428_v27 }
 0x211   :  { %v460_v23 = vpop.trf.xlu1 }
 0x213   :  { %v429_v22 = vpop.trf.xlu0 }
 0x214   :  { %947 = vmatprep.mubr.msk.f32.mxu0 %vm473_vm1, %v429_v22 }
 0x215   :  { %v461_v40 = vpop.trf.xlu1 }
 0x217   :  { %v430_v38 = vpop.trf.xlu0 }
 0x218   :  { %948 = vmatmul.mubr.msk.f32.gmra.mrb[12].mxu0 %vm473_vm1, %v430_v38 }
 0x219   :  { %v462_v42 = vpop.trf.xlu1 }
 0x21b   :  { %v431_v39 = vpop.trf.xlu0 }
 0x21c   :  { %950 = vmatprep.mubr.msk.f32.mxu0 %vm473_vm1, %v431_v39 }
 0x21d   :  { %v463_v45 = vpop.trf.xlu1 }
 0x21f   :  { %v432_v41 = vpop.trf.xlu0 }
 0x220   :  { %951 = vmatmul.mubr.msk.f32.gmra.mrb[14].mxu0 %vm473_vm1, %v432_v41 }
 0x221   :  { %v464_v62 = vpop.trf.xlu1 }
 0x223   :  { %v433_v44 = vpop.trf.xlu0 }
 0x224   :  { %953 = vmatprep.mubr.msk.f32.mxu0 %vm473_vm1, %v433_v44 }
 0x225   :  { %v465_v49 = vpop.trf.xlu1 }
 0x227   :  { %v434_v26 = vpop.trf.xlu0 }
 0x228   :  { %954 = vmatmul.mubr.msk.f32.gmra.mrb[16].mxu0 %vm473_vm1, %v434_v26 }
 0x229   :  { %v466_v20 = vpop.trf.xlu1 }
 0x22b   :  { %v435_v46 = vpop.trf.xlu0 }
 0x22c   :  { %956 = vmatprep.mubr.msk.f32.mxu1 %vm473_vm1, %v435_v46 }
 0x22d   :  { %v467_v52 = vpop.trf.xlu1 }
 0x22f   :  { %v436_v47 = vpop.trf.xlu0 }
 0x230   :  { %957 = vmatmul.mubr.msk.f32.vlgmr.msra.gmra.mrb[0].mxu1 %vm473_vm1, %v436_v47 }
 0x231   :  { %v468_v54 = vpop.trf.xlu1 }
 0x233   :  { %v437_v48 = vpop.trf.xlu0 }
 0x234   :  { %959 = vmatprep.mubr.msk.f32.mxu1 %vm473_vm1, %v437_v48 }
 0x235   :  { %v469_v55 = vpop.trf.xlu1 }
 0x237   :  { %v438_v50 = vpop.trf.xlu0 }
 0x238   :  { %960 = vmatmul.mubr.msk.f32.gmra.mrb[2].mxu1 %vm473_vm1, %v438_v50 }
 0x239   :  { %v470_v15 = vpop.trf.xlu1 }
 0x23b   :  { %v439_v28 = vpop.trf.xlu0 }
 0x23c   :  { %962 = vmatprep.mubr.msk.f32.mxu1 %vm473_vm1, %v439_v28 }
 0x23d   :  { %v471_v24 = vpop.trf.xlu1 }
 0x23f   :  { %v440_v36 = vpop.trf.xlu0 }
 0x240   :  { %963 = vmatmul.mubr.msk.f32.gmra.mrb[4].mxu1 %vm473_vm1, %v440_v36 }
 0x241   :  { %965 = vmatprep.mubr.msk.f32.mxu1 %vm473_vm1, %v457_v21  ;;  %v472_v51 = vpop.trf.xlu1 }
 0x244   :  { %966 = vmatmul.mubr.msk.f32.gmra.mrb[6].mxu1 %vm473_vm1, %v458_v33 }
 0x245   :  { %968 = vmatprep.mubr.msk.f32.mxu1 %vm473_vm1, %v459_v37 }
 0x248   :  { %969 = vmatmul.mubr.msk.f32.gmra.mrb[8].mxu1 %vm473_vm1, %v460_v23 }
 0x249   :  { %971 = vmatprep.mubr.msk.f32.mxu1 %vm473_vm1, %v461_v40 }
 0x24c   :  { %972 = vmatmul.mubr.msk.f32.gmra.mrb[10].mxu1 %vm473_vm1, %v462_v42 }
 0x24d   :  { %974 = vmatprep.mubr.msk.f32.mxu1 %vm473_vm1, %v463_v45 }
 0x250   :  { %975 = vmatmul.mubr.msk.f32.gmra.mrb[12].mxu1 %vm473_vm1, %v464_v62 }
 0x251   :  { %977 = vmatprep.mubr.msk.f32.mxu1 %vm473_vm1, %v465_v49 }
 0x254   :  { %978 = vmatmul.mubr.msk.f32.gmra.mrb[14].mxu1 %vm473_vm1, %v466_v20 }
 0x255   :  { %980 = vmatprep.mubr.msk.f32.mxu1 %vm473_vm1, %v467_v52 }
 0x258   :  { %981 = vmatmul.mubr.msk.f32.gmra.mrb[16].mxu1 %vm473_vm1, %v468_v54 }
 0x259   :  { %983 = vmatprep.mubr.msk.f32.mxu1 %vm473_vm1, %v469_v55 }
 0x25c   :  { %984 = vmatmul.mubr.msk.f32.gmra.mrb[18].mxu1 %vm473_vm1, %v470_v15 }
 0x25d   :  { %986 = vmatprep.mubr.msk.f32.mxu1 %vm473_vm1, %v471_v24 }
 0x260   :  { %987 = vmatmul.mubr.msk.f32.gmra.mrb[20].mxu1 %vm473_vm1, %v472_v51 }
 0x2db   :  { %v943_v29 = vpop.f32.mrb[8].mxu0 }
 0x2dc   :  { %v646_v57 = vadd.f32 %v943_v29, %v1373_v9  ;;  %v640_v56 = vpop.f32.mrb[9].mxu0 }
 0x2dd   :  { %v641_v0 = vadd.f32 %v1373_v9, %v640_v56 }
 0x2de   :  { %801 = vst.msk [vmem:[%s1539_s4 + $0x8] sm:$0xff] %vm799_vm2, %v646_v57 }
 0x2df   :  { %800 = vst.msk [vmem:[%s1539_s4] sm:$0xff] %vm799_vm2, %v641_v0 }
 0x2e3   :  { %v946_v25 = vpop.f32.mrb[10].mxu0 }
 0x2e4   :  { %v656_v58 = vadd.f32 %v946_v25, %v1373_v9  ;;  %v650_v59 = vpop.f32.mrb[11].mxu0 }
 0x2e5   :  { %v651_v31 = vadd.f32 %v1373_v9, %v650_v59 }
 0x2e6   :  { %803 = vst.msk [vmem:[%s1539_s4 + $0x18] sm:$0xff] %vm799_vm2, %v656_v58 }
 0x2e7   :  { %802 = vst.msk [vmem:[%s1539_s4 + $0x10] sm:$0xff] %vm799_vm2, %v651_v31 }
 0x2eb   :  { %v949_v35 = vpop.f32.mrb[12].mxu0 }
 0x2ec   :  { %v666_v30 = vadd.f32 %v949_v35, %v1373_v9  ;;  %v660_v60 = vpop.f32.mrb[13].mxu0 }
 0x2ed   :  { %v661_v2 = vadd.f32 %v1373_v9, %v660_v60 }
 0x2ee   :  { %805 = vst.msk [vmem:[%s1539_s4 + $0x28] sm:$0xff] %vm799_vm2, %v666_v30 }
 0x2ef   :  { %804 = vst.msk [vmem:[%s1539_s4 + $0x20] sm:$0xff] %vm799_vm2, %v661_v2 }
 0x2f3   :  { %v952_v3 = vpop.f32.mrb[14].mxu0 }
 0x2f4   :  { %v676_v6 = vadd.f32 %v952_v3, %v1373_v9  ;;  %v670_v1 = vpop.f32.mrb[15].mxu0 }
 0x2f5   :  { %v671_v61 = vadd.f32 %v1373_v9, %v670_v1 }
 0x2f6   :  { %807 = vst.msk [vmem:[%s1539_s4 + $0x38] sm:$0xff] %vm799_vm2, %v676_v6 }
 0x2f7   :  { %806 = vst.msk [vmem:[%s1539_s4 + $0x30] sm:$0xff] %vm799_vm2, %v671_v61 }
 0x2fb   :  { %v955_v4 = vpop.f32.mrb[16].mxu0 }
 0x2fc   :  { %v686_v5 = vadd.f32 %v955_v4, %v1373_v9  ;;  %v680_v8 = vpop.f32.mrb[17].mxu0 }
 0x2fd   :  { %v681_v7 = vadd.f32 %v1373_v9, %v680_v8 }
 0x2fe   :  { %809 = vst.msk [vmem:[%s1539_s4 + $0x48] sm:$0xff] %vm799_vm2, %v686_v5 }
 0x2ff   :  { %808 = vst.msk [vmem:[%s1539_s4 + $0x40] sm:$0xff] %vm799_vm2, %v681_v7 }
 0x303   :  { %v958_v10 = vpop.f32.mrb[0].mxu1 }
 0x304   :  { %v696_v53 = vadd.f32 %v958_v10, %v1373_v9  ;;  %v690_v63 = vpop.f32.mrb[1].mxu1 }
 0x305   :  { %v691_v11 = vadd.f32 %v1373_v9, %v690_v63 }
 0x306   :  { %811 = vst.msk [vmem:[%s1539_s4 + $0x58] sm:$0xff] %vm799_vm2, %v696_v53 }
 0x307   :  { %810 = vst.msk [vmem:[%s1539_s4 + $0x50] sm:$0xff] %vm799_vm2, %v691_v11 }
 0x30b   :  { %v961_v43 = vpop.f32.mrb[2].mxu1 }
 0x30c   :  { %v706_v12 = vadd.f32 %v961_v43, %v1373_v9  ;;  %v700_v13 = vpop.f32.mrb[3].mxu1 }
 0x30d   :  { %v701_v14 = vadd.f32 %v1373_v9, %v700_v13 }
 0x30e   :  { %813 = vst.msk [vmem:[%s1539_s4 + $0x68] sm:$0xff] %vm799_vm2, %v706_v12 }
 0x30f   :  { %812 = vst.msk [vmem:[%s1539_s4 + $0x60] sm:$0xff] %vm799_vm2, %v701_v14 }
 0x313   :  { %v964_v16 = vpop.f32.mrb[4].mxu1 }
 0x314   :  { %v716_v17 = vadd.f32 %v964_v16, %v1373_v9  ;;  %v710_v18 = vpop.f32.mrb[5].mxu1 }
 0x315   :  { %v711_v19 = vadd.f32 %v1373_v9, %v710_v18 }
 0x316   :  { %815 = vst.msk [vmem:[%s1539_s4 + $0x78] sm:$0xff] %vm799_vm2, %v716_v17 }
 0x317   :  { %814 = vst.msk [vmem:[%s1539_s4 + $0x70] sm:$0xff] %vm799_vm2, %v711_v19  ;;  %v967_v21 = vpop.f32.mrb[6].mxu1 }
 0x318   :  { %v726_v32 = vadd.f32 %v967_v21, %v1373_v9  ;;  %v720_v33 = vpop.f32.mrb[7].mxu1 }
 0x319   :  { %v721_v34 = vadd.f32 %v1373_v9, %v720_v33 }
 0x31a   :  { %817 = vst.msk [vmem:[%s1539_s4 + $0x88] sm:$0xff] %vm799_vm2, %v726_v32 }
 0x31b   :  { %816 = vst.msk [vmem:[%s1539_s4 + $0x80] sm:$0xff] %vm799_vm2, %v721_v34  ;;  %v970_v27 = vpop.f32.mrb[8].mxu1 }
 0x31c   :  { %v736_v37 = vadd.f32 %v970_v27, %v1373_v9  ;;  %v730_v22 = vpop.f32.mrb[9].mxu1 }
 0x31d   :  { %v731_v23 = vadd.f32 %v1373_v9, %v730_v22 }
 0x31e   :  { %819 = vst.msk [vmem:[%s1539_s4 + $0x98] sm:$0xff] %vm799_vm2, %v736_v37 }
 0x31f   :  { %818 = vst.msk [vmem:[%s1539_s4 + $0x90] sm:$0xff] %vm799_vm2, %v731_v23  ;;  %v973_v38 = vpop.f32.mrb[10].mxu1 }
 0x320   :  { %v746_v39 = vadd.f32 %v973_v38, %v1373_v9  ;;  %v740_v40 = vpop.f32.mrb[11].mxu1 }
 0x321   :  { %v741_v41 = vadd.f32 %v1373_v9, %v740_v40 }
 0x322   :  { %821 = vst.msk [vmem:[%s1539_s4 + $0xa8] sm:$0xff] %vm799_vm2, %v746_v39 }
 0x323   :  { %820 = vst.msk [vmem:[%s1539_s4 + $0xa0] sm:$0xff] %vm799_vm2, %v741_v41  ;;  %v976_v42 = vpop.f32.mrb[12].mxu1 }
 0x324   :  { %v756_v44 = vadd.f32 %v976_v42, %v1373_v9  ;;  %v750_v26 = vpop.f32.mrb[13].mxu1 }
 0x325   :  { %v751_v45 = vadd.f32 %v1373_v9, %v750_v26 }
 0x326   :  { %823 = vst.msk [vmem:[%s1539_s4 + $0xb8] sm:$0xff] %vm799_vm2, %v756_v44 }
 0x327   :  { %822 = vst.msk [vmem:[%s1539_s4 + $0xb0] sm:$0xff] %vm799_vm2, %v751_v45  ;;  %v979_v46 = vpop.f32.mrb[14].mxu1 }
 0x328   :  { %v766_v62 = vadd.f32 %v979_v46, %v1373_v9  ;;  %v760_v47 = vpop.f32.mrb[15].mxu1 }
 0x329   :  { %v761_v48 = vadd.f32 %v1373_v9, %v760_v47 }
 0x32a   :  { %825 = vst.msk [vmem:[%s1539_s4 + $0xc8] sm:$0xff] %vm799_vm2, %v766_v62 }
 0x32b   :  { %824 = vst.msk [vmem:[%s1539_s4 + $0xc0] sm:$0xff] %vm799_vm2, %v761_v48  ;;  %v982_v49 = vpop.f32.mrb[16].mxu1 }
 0x32c   :  { %v776_v50 = vadd.f32 %v982_v49, %v1373_v9  ;;  %v770_v20 = vpop.f32.mrb[17].mxu1 }
 0x32d   :  { %v771_v28 = vadd.f32 %v1373_v9, %v770_v20 }
 0x32e   :  { %827 = vst.msk [vmem:[%s1539_s4 + $0xd8] sm:$0xff] %vm799_vm2, %v776_v50 }
 0x32f   :  { %826 = vst.msk [vmem:[%s1539_s4 + $0xd0] sm:$0xff] %vm799_vm2, %v771_v28  ;;  %v985_v36 = vpop.f32.mrb[18].mxu1 }
 0x330   :  { %v786_v52 = vadd.f32 %v985_v36, %v1373_v9  ;;  %v780_v54 = vpop.f32.mrb[19].mxu1 }
 0x331   :  { %v781_v55 = vadd.f32 %v1373_v9, %v780_v54 }
 0x332   :  { %829 = vst.msk [vmem:[%s1539_s4 + $0xe8] sm:$0xff] %vm799_vm2, %v786_v52 }
 0x333   :  { %828 = vst.msk [vmem:[%s1539_s4 + $0xe0] sm:$0xff] %vm799_vm2, %v781_v55  ;;  %v988_v15 = vpop.f32.mrb[20].mxu1 }
 0x334   :  { %v796_v24 = vadd.f32 %v988_v15, %v1373_v9  ;;  %v790_v51 = vpop.f32.mrb[21].mxu1 }
 0x335   :  { %v791_v29 = vadd.f32 %v1373_v9, %v790_v51 }
 0x336   :  { %831 = vst.msk [vmem:[%s1539_s4 + $0xf8] sm:$0xff] %vm799_vm2, %v796_v24 }
 0x337   :  { %830 = vst.msk [vmem:[%s1539_s4 + $0xf0] sm:$0xff] %vm799_vm2, %v791_v29 }

</bundles_post_ra>
